<compile_context>
chip_gen: v6e
topology: v6e:2x2x1
jax: 0.10.0
libtpu: 0.0.40
codegen_flags: <defaults>
</compile_context>

<pallas_src>
import functools

import jax
import jax.numpy as jnp
from jax.experimental import pallas as pl
from jax.experimental.pallas import tpu as pltpu

_LANE = 128
_BF16_SUBLANE = 16  # bf16 native vreg tile is (16, 128)


def _round_up(x, m):
    return (x + m - 1) // m * m


def _decoder_kernel(z_ref, w1_ref, b1_ref, w2_ref, b2_ref, o_ref):
    # z arrives f32; cast to bf16 in-kernel (VPU cast hides under MXU work).
    z = z_ref[...].astype(jnp.bfloat16)
    # fc1: bf16 MXU matmul, f32 accumulation; bias + ReLU in f32.
    h = jnp.dot(z, w1_ref[...], preferred_element_type=jnp.float32)
    h = jnp.maximum(h + b1_ref[...], 0.0)
    # fc2: bf16 MXU matmul, f32 accumulation; bias in f32.
    y = jnp.dot(h.astype(jnp.bfloat16), w2_ref[...],
                preferred_element_type=jnp.float32)
    y = y + b2_ref[...]
    # sigmoid = 1 / (1 + exp(-y)); exp and approx-reciprocal both run on the
    # EUP slot, which has slack under the MXU.
    o_ref[...] = pl.reciprocal(1.0 + jnp.exp(-y), approx=True).astype(o_ref.dtype)


def prepare_decoder_params(w1, b1, w2, b2):
    """One-time padding + bf16 cast of the decoder parameters.

    Input layout: w1 (latent_dim, hidden_dim), w2 (hidden_dim, output_dim)
    (i.e. transposed vs. PyTorch), biases (hidden_dim,) / (output_dim,) or 2D.
    hidden_dim is zero-padded to a multiple of 128 so the fc1 output / fc2
    input stay lane-dense; output_dim is left at its true width (784).
    """
    hidden_dim = w1.shape[1]
    hidden_pad = _round_up(hidden_dim, _LANE)
    w1p = jnp.pad(w1, ((0, 0), (0, hidden_pad - hidden_dim))).astype(jnp.bfloat16)
    b1p = jnp.pad(b1.reshape(1, -1).astype(jnp.float32),
                  ((0, 0), (0, hidden_pad - hidden_dim)))
    w2p = jnp.pad(w2, ((0, hidden_pad - hidden_dim), (0, 0))).astype(jnp.bfloat16)
    b2p = b2.reshape(1, -1).astype(jnp.float32)
    return w1p, b1p, w2p, b2p


def _pick_block_b(B, block_b):
    """Batch tile: multiple of 16 rows (bf16 sublane pack); for B > 16 cap at
    ceil(B/2) so the grid has >= 2 steps (both v7x TensorCores get work)."""
    if B <= _BF16_SUBLANE:
        return _BF16_SUBLANE
    half = _round_up(-(-B // 2), _BF16_SUBLANE)
    eff = min(block_b, half)
    eff = max(_BF16_SUBLANE, eff - eff % _BF16_SUBLANE)
    return eff


@functools.partial(jax.jit, static_argnames=("block_b",))
def decoder_forward(z, w1p, b1p, w2p, b2p, *, block_b=1024):
    """z: (B, latent_dim) f32 -> (B, output_dim) f32.

    w1p/b1p/w2p/b2p must come from prepare_decoder_params().
    """
    B, latent_dim = z.shape
    hidden_pad = w1p.shape[1]
    output_dim = w2p.shape[1]

    block_b_eff = _pick_block_b(B, block_b)
    b_pad = _round_up(B, block_b_eff)

    zp = jnp.pad(z.astype(jnp.float32), ((0, b_pad - B), (0, 0)))

    grid = (b_pad // block_b_eff,)

    cost = pl.CostEstimate(
        flops=2 * b_pad * (latent_dim * hidden_pad + hidden_pad * output_dim),
        transcendentals=b_pad * output_dim,
        bytes_accessed=(zp.size * 4 + w1p.size * 2 + w2p.size * 2
                        + b1p.size * 4 + b2p.size * 4 + b_pad * output_dim * 4),
    )

    out = pl.pallas_call(
        _decoder_kernel,
        out_shape=jax.ShapeDtypeStruct((b_pad, output_dim), jnp.float32),
        grid_spec=pltpu.PrefetchScalarGridSpec(
            num_scalar_prefetch=0,
            grid=grid,
            in_specs=[
                # per-grid-step batch tile of z (f32; cast to bf16 in-kernel)
                pl.BlockSpec((block_b_eff, latent_dim), lambda i: (i, 0)),
                # resident weights / biases: constant block, single-buffered
                pl.BlockSpec((latent_dim, hidden_pad), lambda i: (0, 0),
                             pipeline_mode=pl.Buffered(1)),
                pl.BlockSpec((1, hidden_pad), lambda i: (0, 0),
                             pipeline_mode=pl.Buffered(1)),
                pl.BlockSpec((hidden_pad, output_dim), lambda i: (0, 0),
                             pipeline_mode=pl.Buffered(1)),
                pl.BlockSpec((1, output_dim), lambda i: (0, 0),
                             pipeline_mode=pl.Buffered(1)),
            ],
            out_specs=pl.BlockSpec((block_b_eff, output_dim), lambda i: (i, 0)),
        ),
        compiler_params=pltpu.CompilerParams(
            dimension_semantics=("parallel",),
        ),
        cost_estimate=cost,
    )(zp, w1p, b1p, w2p, b2p)

    # Only slice when the batch was actually padded (no extra pass otherwise).
    if b_pad == B:
        return out
    return out[:B]


def init_decoder_params(key, latent_dim=20, hidden_dim=400, output_dim=784,
                        dtype=jnp.float32):
    """Deterministic synthetic init (PyTorch-Linear-style uniform bounds)."""
    k1, k2, k3, k4 = jax.random.split(key, 4)
    bound1 = 1.0 / jnp.sqrt(latent_dim)
    bound2 = 1.0 / jnp.sqrt(hidden_dim)
    # Stored as (in_features, out_features) — transpose of PyTorch layout.
    w1 = jax.random.uniform(k1, (latent_dim, hidden_dim), dtype,
                            minval=-bound1, maxval=bound1)
    b1 = jax.random.uniform(k2, (1, hidden_dim), dtype,
                            minval=-bound1, maxval=bound1)
    w2 = jax.random.uniform(k3, (hidden_dim, output_dim), dtype,
                            minval=-bound2, maxval=bound2)
    b2 = jax.random.uniform(k4, (1, output_dim), dtype,
                            minval=-bound2, maxval=bound2)
    return w1, b1, w2, b2


def decoder_reference(z, w1, b1, w2, b2):
    h = jnp.maximum(z @ w1 + b1, 0.0)
    return jax.nn.sigmoid(h @ w2 + b2)


if __name__ == "__main__":
    latent_dim, hidden_dim, output_dim = 20, 400, 784

    key = jax.random.PRNGKey(0)
    kz, kp = jax.random.split(key)
    w1, b1, w2, b2 = init_decoder_params(kp, latent_dim, hidden_dim, output_dim)
    # One-time parameter prep (padding + bf16 cast), hoisted out of the call.
    params = jax.tree_util.tree_map(jax.block_until_ready,
                                    prepare_decoder_params(w1, b1, w2, b2))

    # Test #1: batch=16 (single 16-row tile, exact multiple).
    z = jax.random.normal(kz, (16, latent_dim), dtype=jnp.float32)
    out = jax.block_until_ready(decoder_forward(z, *params))
    ref = decoder_reference(z, w1, b1, w2, b2)
    assert out.shape == (16, output_dim)
    err = float(jnp.max(jnp.abs(out - ref)))
    assert err < 2e-2, f"mismatch vs reference (max abs err {err})"

    # Test #2: non-multiple batch exercises the padding / remainder path.
    z2 = jax.random.normal(jax.random.PRNGKey(1), (13, latent_dim),
                           dtype=jnp.float32)
    out2 = jax.block_until_ready(decoder_forward(z2, *params))
    ref2 = decoder_reference(z2, w1, b1, w2, b2)
    assert out2.shape == (13, output_dim)
    err2 = float(jnp.max(jnp.abs(out2 - ref2)))
    assert err2 < 2e-2, f"mismatch vs reference (max abs err {err2})"

    # Test #3: batch=100 -> tile capped at ceil(B/2)=64, grid of 2 steps
    # (exercises the v7x two-TensorCore path and batch padding together).
    z3 = jax.random.normal(jax.random.PRNGKey(2), (100, latent_dim),
                           dtype=jnp.float32)
    out3 = jax.block_until_ready(decoder_forward(z3, *params))
    ref3 = decoder_reference(z3, w1, b1, w2, b2)
    assert out3.shape == (100, output_dim)
    err3 = float(jnp.max(jnp.abs(out3 - ref3)))
    assert err3 < 2e-2, f"mismatch vs reference (max abs err {err3})"

    print("KERNEL_OK")
</pallas_src>

<mosaic_0001>
module attributes {stable_mosaic.version = 11 : i64} {
  func.func @_decoder_kernel(%arg0: i32, %arg1: memref<16x20xf32, #tpu.memory_space<vmem>>, %arg2: memref<20x512xbf16, #tpu.memory_space<vmem>>, %arg3: memref<1x512xf32, #tpu.memory_space<vmem>>, %arg4: memref<512x784xbf16, #tpu.memory_space<vmem>>, %arg5: memref<1x784xf32, #tpu.memory_space<vmem>>, %arg6: memref<16x784xf32, #tpu.memory_space<vmem>>) attributes {dimension_semantics = [#tpu.dimension_semantics<parallel>], iteration_bounds = array<i64: 1>, scalar_prefetch = 0 : i64, scratch_operands = 0 : i64, tpu.core_type = #tpu.core_type<tc>, window_params = [{transform_indices = @transform_0, window_bounds = array<i64: 16, 20>}, {pipeline_mode = #tpu.pipeline_mode<synchronous>, transform_indices = @transform_1, window_bounds = array<i64: 20, 512>}, {pipeline_mode = #tpu.pipeline_mode<synchronous>, transform_indices = @transform_2, window_bounds = array<i64: 1, 512>}, {pipeline_mode = #tpu.pipeline_mode<synchronous>, transform_indices = @transform_3, window_bounds = array<i64: 512, 784>}, {pipeline_mode = #tpu.pipeline_mode<synchronous>, transform_indices = @transform_4, window_bounds = array<i64: 1, 784>}, {transform_indices = @transform_5, window_bounds = array<i64: 16, 784>}]} {
    %c0 = arith.constant 0 : index
    %c0_0 = arith.constant 0 : index
    %0 = vector.load %arg1[%c0, %c0_0] : memref<16x20xf32, #tpu.memory_space<vmem>>, vector<16x20xf32>
    %1 = arith.truncf %0 : vector<16x20xf32> to vector<16x20xbf16>
    %c0_1 = arith.constant 0 : index
    %c0_2 = arith.constant 0 : index
    %2 = vector.load %arg2[%c0_1, %c0_2] : memref<20x512xbf16, #tpu.memory_space<vmem>>, vector<20x512xbf16>
    %cst = arith.constant dense<0.000000e+00> : vector<16x512xf32>
    %3 = tpu.matmul %1, %2, %cst {dimension_numbers = #tpu.dot_dimension_numbers<[1], [0], [0], [1], [0, 0, 1, 1], [], []>} : vector<16x20xbf16>, vector<20x512xbf16>, vector<16x512xf32> -> vector<16x512xf32>
    %c0_3 = arith.constant 0 : index
    %c0_4 = arith.constant 0 : index
    %4 = vector.load %arg3[%c0_3, %c0_4] : memref<1x512xf32, #tpu.memory_space<vmem>>, vector<1x512xf32>
    %5 = vector.broadcast %4 : vector<1x512xf32> to vector<16x512xf32>
    %6 = arith.addf %3, %5 : vector<16x512xf32>
    %cst_5 = arith.constant 0.000000e+00 : f32
    %7 = vector.broadcast %cst_5 : f32 to vector<16x512xf32>
    %8 = arith.maximumf %6, %7 : vector<16x512xf32>
    %9 = arith.truncf %8 : vector<16x512xf32> to vector<16x512xbf16>
    %c0_6 = arith.constant 0 : index
    %c0_7 = arith.constant 0 : index
    %10 = vector.load %arg4[%c0_6, %c0_7] : memref<512x784xbf16, #tpu.memory_space<vmem>>, vector<512x784xbf16>
    %cst_8 = arith.constant dense<0.000000e+00> : vector<16x784xf32>
    %11 = tpu.matmul %9, %10, %cst_8 {dimension_numbers = #tpu.dot_dimension_numbers<[1], [0], [0], [1], [0, 0, 1, 1], [], []>} : vector<16x512xbf16>, vector<512x784xbf16>, vector<16x784xf32> -> vector<16x784xf32>
    %c0_9 = arith.constant 0 : index
    %c0_10 = arith.constant 0 : index
    %12 = vector.load %arg5[%c0_9, %c0_10] : memref<1x784xf32, #tpu.memory_space<vmem>>, vector<1x784xf32>
    %13 = vector.broadcast %12 : vector<1x784xf32> to vector<16x784xf32>
    %14 = arith.addf %11, %13 : vector<16x784xf32>
    %cst_11 = arith.constant 0.000000e+00 : f32
    %15 = vector.broadcast %cst_11 : f32 to vector<16x784xf32>
    %16 = arith.subf %15, %14 : vector<16x784xf32>
    %17 = math.exp %16 : vector<16x784xf32>
    %cst_12 = arith.constant 1.000000e+00 : f32
    %18 = vector.broadcast %cst_12 : f32 to vector<16x784xf32>
    %19 = arith.addf %18, %17 : vector<16x784xf32>
    %20 = tpu.reciprocal %19 {approx = true} : vector<16x784xf32> -> vector<16x784xf32>
    %c0_13 = arith.constant 0 : index
    %c0_14 = arith.constant 0 : index
    %21 = vector.load %arg6[%c0_13, %c0_14] : memref<16x784xf32, #tpu.memory_space<vmem>>, vector<16x784xf32>
    tpu.vector_store %arg6[%c0_13, %c0_14], %20 {strides = array<i32>} : memref<16x784xf32, #tpu.memory_space<vmem>>, vector<16x784xf32>,
    return
  }
  func.func @transform_0(%arg0: i32) -> (i32, i32) {
    %c0_i32 = arith.constant 0 : i32
    %c0_i32_0 = arith.constant 0 : i32
    return %arg0, %c0_i32 : i32, i32
  }
  func.func @transform_1(%arg0: i32) -> (i32, i32) {
    %c0_i32 = arith.constant 0 : i32
    %c0_i32_0 = arith.constant 0 : i32
    %c0_i32_1 = arith.constant 0 : i32
    return %c0_i32, %c0_i32_0 : i32, i32
  }
  func.func @transform_2(%arg0: i32) -> (i32, i32) {
    %c0_i32 = arith.constant 0 : i32
    %c0_i32_0 = arith.constant 0 : i32
    %c0_i32_1 = arith.constant 0 : i32
    return %c0_i32, %c0_i32_0 : i32, i32
  }
  func.func @transform_3(%arg0: i32) -> (i32, i32) {
    %c0_i32 = arith.constant 0 : i32
    %c0_i32_0 = arith.constant 0 : i32
    %c0_i32_1 = arith.constant 0 : i32
    return %c0_i32, %c0_i32_0 : i32, i32
  }
  func.func @transform_4(%arg0: i32) -> (i32, i32) {
    %c0_i32 = arith.constant 0 : i32
    %c0_i32_0 = arith.constant 0 : i32
    %c0_i32_1 = arith.constant 0 : i32
    return %c0_i32, %c0_i32_0 : i32, i32
  }
  func.func @transform_5(%arg0: i32) -> (i32, i32) {
    %c0_i32 = arith.constant 0 : i32
    %c0_i32_0 = arith.constant 0 : i32
    return %arg0, %c0_i32 : i32, i32
  }
}

</mosaic_0001>

<bundles_post_ra>
// kernel: decoder_forward.1
= control target key start
LH: loop header
LB: loop body
LE: loop exit
PB: predicated region body
PF: predicated region fallthrough
CT: control target
= control target key end

     0   :  { %vm87_vm0 = vcmask 1041408   ;;  %v2776_v15 = vmov 0   ;;  %vm83_vm1 = vcmask 162816   ;;  %s3573_s0 = inlined_call_operand.vmem [shape: f32[16,20], index: 0, kind: input, shape index: {}]   ;;  %s3574_s1 = inlined_call_operand.vmem [shape: bf16[20,512], index: 1, kind: input, shape index: {}]   ;;  %s3575_s2 = inlined_call_operand.vmem [shape: f32[1,512], index: 2, kind: input, shape index: {}]   ;;  %s3576_s3 = inlined_call_operand.vmem [shape: bf16[512,784], index: 3, kind: input, shape index: {}]   ;;  %s3577_s4 = inlined_call_operand.vmem [shape: f32[1,784], index: 4, kind: input, shape index: {}]   ;;  %s3578_s5 = inlined_call_operand.hbm [shape: f32[16,784], index: 5, kind: output, shape index: {}]  }
   0x1   :  { %v29_v0 = vld [vmem:[%s3574_s1 + $0x20] sm:$0x33]  ;;  %v30_v1 = vld [vmem:[%s3574_s1 + $0x28] sm:$0x33]  ;;  %132 = vmatprep.mubr.bf16.mxu0 %v2776_v15  ;;  %175 = vmatprep.mubr.bf16.mxu1 %v2776_v15  ;;  %v2386_v20 = vld [vmem:[%s3576_s3 + $0x154] ss:$28 sps:$4 sm:$0xff]  }
   0x2   :  { %v2089_v2 = vcombine.high %v29_v0, %v29_v0  ;;  %v2091_v3 = vcombine.high %v30_v1, %v30_v1  ;;  %v2088_v4 = vcombine.low %v29_v0, %v29_v0  ;;  %v2090_v5 = vcombine.low %v30_v1, %v30_v1  ;;  %v2372_v6 = vld [vmem:[%s3574_s1 + $0x4] ss:$16 sps:$4 sm:$0xff]   ;;  %v2374_v7 = vld [vmem:[%s3574_s1 + $0xc] ss:$16 sps:$4 sm:$0xff]   ;;  %v2376_v8 = vld [vmem:[%s3574_s1] ss:$16 sps:$4 sm:$0xff]  }
   0x3   :  { %v2377_v11 = vld [vmem:[%s3574_s1 + $0x8] ss:$16 sps:$4 sm:$0xff]   ;;  %v22_v12 = vld [vmem:[%s3573_s0] sm:$0xff]  ;;  %v2389_v21 = vld [vmem:[%s3576_s3 + $0x4d4] ss:$28 sps:$4 sm:$0xff]  }
   0x4   :  { %2092 = vmatprep.subr.msk.bf16.mxu0 %vm87_vm0, %v2089_v2  ;;  %2094 = vmatprep.subr.msk.bf16.mxu1 %vm87_vm0, %v2091_v3  ;;  %v89_v9 = vsel %vm87_vm0, %v2088_v4, 0  ;;  %v95_v10 = vsel %vm87_vm0, %v2090_v5, 0  ;;  %v23_v13 = vld [vmem:[%s3573_s0 + $0x8] sm:$0xff]  ;;  %v2392_v24 = vld [vmem:[%s3576_s3 + $0x11c] ss:$28 sps:$4 sm:$0xff]  }
   0x5   :  { %113 = vmatpush1.bf16.msra.mxu0 %v89_v9  ;;  %156 = vmatpush1.bf16.msra.mxu1 %v95_v10  ;;  %v2380_v14 = vld [vmem:[%s3576_s3 + $0x18c] ss:$28 sps:$4 sm:$0xff]   ;;  %v24_v17 = vpack.c.bf16 %v23_v13, %v22_v12  ;;  %v2395_v25 = vld [vmem:[%s3576_s3 + $0x49c] ss:$28 sps:$4 sm:$0xff]   ;;  %v2398_v28 = vld [vmem:[%s3576_s3 + $0xe4] ss:$28 sps:$4 sm:$0xff]  }
   0x6   :  { %114 = vmatprep.subr.bf16.mxu0 %v2372_v6  ;;  %157 = vmatprep.subr.bf16.mxu1 %v2374_v7  ;;  %v2383_v16 = vld [vmem:[%s3576_s3 + $0x50c] ss:$28 sps:$4 sm:$0xff]   ;;  %v2390_v26 = vld [vmem:[%s3576_s3 + $0x118] ss:$28 sps:$4 sm:$0xff]   ;;  %v2401_v29 = vld [vmem:[%s3576_s3 + $0x464] ss:$28 sps:$4 sm:$0xff]  }
   0x7   :  { %v2378_v18 = vld [vmem:[%s3576_s3 + $0x188] ss:$28 sps:$4 sm:$0xff]   ;;  %v2384_v22 = vld [vmem:[%s3576_s3 + $0x150] ss:$28 sps:$4 sm:$0xff]   ;;  %v2393_v27 = vld [vmem:[%s3576_s3 + $0x498] ss:$28 sps:$4 sm:$0xff]  }
   0x8   :  { %v2381_v19 = vld [vmem:[%s3576_s3 + $0x508] ss:$28 sps:$4 sm:$0xff]   ;;  %v2387_v23 = vld [vmem:[%s3576_s3 + $0x4d0] ss:$28 sps:$4 sm:$0xff]   ;;  %v2396_v30 = vld [vmem:[%s3576_s3 + $0xe0] ss:$28 sps:$4 sm:$0xff]  }
   0x9   :  { %115 = vmatpush1.bf16.msra.mxu0 %v2376_v8  ;;  %158 = vmatpush1.bf16.msra.mxu1 %v2377_v11  ;;  %v2399_v31 = vld [vmem:[%s3576_s3 + $0x460] ss:$28 sps:$4 sm:$0xff]   ;;  %v2404_v32 = vld [vmem:[%s3576_s3 + $0xac] ss:$28 sps:$4 sm:$0xff]   ;;  %v2410_v36 = vld [vmem:[%s3576_s3 + $0x74] ss:$28 sps:$4 sm:$0xff]  }
   0xa   :  { %1643 = vmatprep.subr.bf16.mxu0 %v2380_v14  ;;  %1686 = vmatprep.subr.bf16.mxu1 %v2383_v16  ;;  %v2407_v33 = vld [vmem:[%s3576_s3 + $0x42c] ss:$28 sps:$4 sm:$0xff]   ;;  %v2413_v37 = vld [vmem:[%s3576_s3 + $0x3f4] ss:$28 sps:$4 sm:$0xff]   ;;  %v2416_v40 = vld [vmem:[%s3576_s3 + $0x3c] ss:$28 sps:$4 sm:$0xff]  }
   0xb   :  { %v2402_v34 = vld [vmem:[%s3576_s3 + $0xa8] ss:$28 sps:$4 sm:$0xff]   ;;  %v2408_v38 = vld [vmem:[%s3576_s3 + $0x70] ss:$28 sps:$4 sm:$0xff]   ;;  %v2419_v41 = vld [vmem:[%s3576_s3 + $0x3bc] ss:$28 sps:$4 sm:$0xff]  }
   0xc   :  { %2093 = vmatmul.mubr.msk.bf16.vlgmr.msra.gmra.mxu0 %vm83_vm1, %v24_v17  ;;  %2095 = vmatmul.mubr.msk.bf16.vlgmr.msra.gmra.mxu1 %vm83_vm1, %v24_v17  ;;  %v2405_v35 = vld [vmem:[%s3576_s3 + $0x428] ss:$28 sps:$4 sm:$0xff]   ;;  %v2411_v39 = vld [vmem:[%s3576_s3 + $0x3f0] ss:$28 sps:$4 sm:$0xff]   ;;  %v2414_v42 = vld [vmem:[%s3576_s3 + $0x38] ss:$28 sps:$4 sm:$0xff]  }
   0xd   :  { %1644 = vmatpush1.bf16.msra.mxu0 %v2378_v18  ;;  %1687 = vmatpush1.bf16.msra.mxu1 %v2381_v19  ;;  %v2417_v43 = vld [vmem:[%s3576_s3 + $0x3b8] ss:$28 sps:$4 sm:$0xff]   ;;  %v2422_v44 = vld [vmem:[%s3576_s3 + $0x4] ss:$28 sps:$4 sm:$0xff]   ;;  %v2428_v48 = vld [vmem:[%s3576_s3 + $0x34c] ss:$28 sps:$4 sm:$0xff]  }
   0xe   :  { %1645 = vmatprep.subr.bf16.mxu0 %v2386_v20  ;;  %1688 = vmatprep.subr.bf16.mxu1 %v2389_v21  ;;  %v2425_v45 = vld [vmem:[%s3576_s3 + $0x384] ss:$28 sps:$4 sm:$0xff]   ;;  %v2431_v49 = vld [vmem:[%s3576_s3 + $0x6cc] ss:$28 sps:$4 sm:$0xff]   ;;  %v2434_v52 = vld [vmem:[%s3576_s3 + $0x314] ss:$28 sps:$4 sm:$0xff]  }
   0xf   :  { %v2420_v46 = vld [vmem:[%s3576_s3] ss:$28 sps:$4 sm:$0xff]   ;;  %v2426_v50 = vld [vmem:[%s3576_s3 + $0x348] ss:$28 sps:$4 sm:$0xff]   ;;  %v2437_v53 = vld [vmem:[%s3576_s3 + $0x694] ss:$28 sps:$4 sm:$0xff]  }
  0x10   :  { %v2423_v47 = vld [vmem:[%s3576_s3 + $0x380] ss:$28 sps:$4 sm:$0xff]   ;;  %v2429_v51 = vld [vmem:[%s3576_s3 + $0x6c8] ss:$28 sps:$4 sm:$0xff]   ;;  %v2432_v54 = vld [vmem:[%s3576_s3 + $0x310] ss:$28 sps:$4 sm:$0xff]  }
  0x11   :  { %1646 = vmatpush1.bf16.msra.mxu0 %v2384_v22  ;;  %1689 = vmatpush1.bf16.msra.mxu1 %v2387_v23  ;;  %v2435_v55 = vld [vmem:[%s3576_s3 + $0x690] ss:$28 sps:$4 sm:$0xff]   ;;  %v2440_v56 = vld [vmem:[%s3576_s3 + $0x2dc] ss:$28 sps:$4 sm:$0xff]   ;;  %v2446_v60 = vld [vmem:[%s3576_s3 + $0x2a4] ss:$28 sps:$4 sm:$0xff]  }
  0x12   :  { %1647 = vmatprep.subr.bf16.mxu0 %v2392_v24  ;;  %1690 = vmatprep.subr.bf16.mxu1 %v2395_v25  ;;  %v2443_v57 = vld [vmem:[%s3576_s3 + $0x65c] ss:$28 sps:$4 sm:$0xff]   ;;  %v2449_v61 = vld [vmem:[%s3576_s3 + $0x624] ss:$28 sps:$4 sm:$0xff]   ;;  %v2452_v0 = vld [vmem:[%s3576_s3 + $0x26c] ss:$28 sps:$4 sm:$0xff]  }
  0x13   :  { %v2438_v58 = vld [vmem:[%s3576_s3 + $0x2d8] ss:$28 sps:$4 sm:$0xff]   ;;  %v2444_v62 = vld [vmem:[%s3576_s3 + $0x2a0] ss:$28 sps:$4 sm:$0xff]   ;;  %v2455_v1 = vld [vmem:[%s3576_s3 + $0x5ec] ss:$28 sps:$4 sm:$0xff]  }
  0x14   :  { %v2441_v59 = vld [vmem:[%s3576_s3 + $0x658] ss:$28 sps:$4 sm:$0xff]   ;;  %v2447_v63 = vld [vmem:[%s3576_s3 + $0x620] ss:$28 sps:$4 sm:$0xff]   ;;  %v2450_v2 = vld [vmem:[%s3576_s3 + $0x268] ss:$28 sps:$4 sm:$0xff]  }
  0x15   :  { %1648 = vmatpush1.bf16.msra.mxu0 %v2390_v26  ;;  %1691 = vmatpush1.bf16.msra.mxu1 %v2393_v27  ;;  %v2453_v3 = vld [vmem:[%s3576_s3 + $0x5e8] ss:$28 sps:$4 sm:$0xff]   ;;  %v2458_v4 = vld [vmem:[%s3576_s3 + $0x234] ss:$28 sps:$4 sm:$0xff]   ;;  %v2464_v8 = vld [vmem:[%s3576_s3 + $0x1fc] ss:$28 sps:$4 sm:$0xff]  }
  0x16   :  { %1649 = vmatprep.subr.bf16.mxu0 %v2398_v28  ;;  %1692 = vmatprep.subr.bf16.mxu1 %v2401_v29  ;;  %v2461_v5 = vld [vmem:[%s3576_s3 + $0x5b4] ss:$28 sps:$4 sm:$0xff]   ;;  %v2467_v9 = vld [vmem:[%s3576_s3 + $0x57c] ss:$28 sps:$4 sm:$0xff]   ;;  %v2470_v12 = vld [vmem:[%s3576_s3 + $0x1c4] ss:$28 sps:$4 sm:$0xff]  }
  0x17   :  { %v2456_v6 = vld [vmem:[%s3576_s3 + $0x230] ss:$28 sps:$4 sm:$0xff]   ;;  %v2462_v10 = vld [vmem:[%s3576_s3 + $0x1f8] ss:$28 sps:$4 sm:$0xff]   ;;  %v2473_v13 = vld [vmem:[%s3576_s3 + $0x544] ss:$28 sps:$4 sm:$0xff]  }
  0x18   :  { %v2459_v7 = vld [vmem:[%s3576_s3 + $0x5b0] ss:$28 sps:$4 sm:$0xff]   ;;  %v2465_v11 = vld [vmem:[%s3576_s3 + $0x578] ss:$28 sps:$4 sm:$0xff]   ;;  %v2468_v14 = vld [vmem:[%s3576_s3 + $0x1c0] ss:$28 sps:$4 sm:$0xff]  }
  0x19   :  { %1650 = vmatpush1.bf16.msra.mxu0 %v2396_v30  ;;  %1693 = vmatpush1.bf16.msra.mxu1 %v2399_v31  ;;  %v2471_v15 = vld [vmem:[%s3576_s3 + $0x540] ss:$28 sps:$4 sm:$0xff]   ;;  %v2476_v16 = vld [vmem:[%s3576_s3 + $0x194] ss:$28 sps:$4 sm:$0xff]  }
  0x1a   :  { %1651 = vmatprep.subr.bf16.mxu0 %v2404_v32  ;;  %1694 = vmatprep.subr.bf16.mxu1 %v2407_v33  ;;  %v2479_v17 = vld [vmem:[%s3576_s3 + $0x514] ss:$28 sps:$4 sm:$0xff]  }
  0x1d   :  { %1652 = vmatpush1.bf16.msra.mxu0 %v2402_v34  ;;  %1695 = vmatpush1.bf16.msra.mxu1 %v2405_v35 }
  0x1e   :  { %1653 = vmatprep.subr.bf16.mxu0 %v2410_v36  ;;  %1696 = vmatprep.subr.bf16.mxu1 %v2413_v37 }
  0x21   :  { %1654 = vmatpush1.bf16.msra.mxu0 %v2408_v38  ;;  %1697 = vmatpush1.bf16.msra.mxu1 %v2411_v39 }
  0x22   :  { %1655 = vmatprep.subr.bf16.mxu0 %v2416_v40  ;;  %1698 = vmatprep.subr.bf16.mxu1 %v2419_v41 }
  0x25   :  { %1656 = vmatpush1.bf16.msra.mxu0 %v2414_v42  ;;  %1699 = vmatpush1.bf16.msra.mxu1 %v2417_v43 }
  0x26   :  { %1657 = vmatprep.subr.bf16.mxu0 %v2422_v44  ;;  %1700 = vmatprep.subr.bf16.mxu1 %v2425_v45 }
  0x29   :  { %1658 = vmatpush1.bf16.msra.mxu0 %v2420_v46  ;;  %1701 = vmatpush1.bf16.msra.mxu1 %v2423_v47 }
  0x2a   :  { %1659 = vmatprep.subr.bf16.mxu0 %v2428_v48  ;;  %1702 = vmatprep.subr.bf16.mxu1 %v2431_v49 }
  0x2d   :  { %1660 = vmatpush2.bf16.msra.mxu0 %v2426_v50  ;;  %1703 = vmatpush2.bf16.msra.mxu1 %v2429_v51 }
  0x2e   :  { %1661 = vmatprep.subr.bf16.mxu0 %v2434_v52  ;;  %1704 = vmatprep.subr.bf16.mxu1 %v2437_v53 }
  0x31   :  { %1662 = vmatpush2.bf16.msra.mxu0 %v2432_v54  ;;  %1705 = vmatpush2.bf16.msra.mxu1 %v2435_v55 }
  0x32   :  { %1663 = vmatprep.subr.bf16.mxu0 %v2440_v56  ;;  %1706 = vmatprep.subr.bf16.mxu1 %v2443_v57 }
  0x35   :  { %1664 = vmatpush2.bf16.msra.mxu0 %v2438_v58  ;;  %1707 = vmatpush2.bf16.msra.mxu1 %v2441_v59 }
  0x36   :  { %1665 = vmatprep.subr.bf16.mxu0 %v2446_v60  ;;  %1708 = vmatprep.subr.bf16.mxu1 %v2449_v61 }
  0x39   :  { %1666 = vmatpush2.bf16.msra.mxu0 %v2444_v62  ;;  %1709 = vmatpush2.bf16.msra.mxu1 %v2447_v63 }
  0x3a   :  { %1667 = vmatprep.subr.bf16.mxu0 %v2452_v0  ;;  %1710 = vmatprep.subr.bf16.mxu1 %v2455_v1 }
  0x3d   :  { %1668 = vmatpush2.bf16.msra.mxu0 %v2450_v2  ;;  %1711 = vmatpush2.bf16.msra.mxu1 %v2453_v3 }
  0x3e   :  { %1669 = vmatprep.subr.bf16.mxu0 %v2458_v4  ;;  %1712 = vmatprep.subr.bf16.mxu1 %v2461_v5 }
  0x41   :  { %1670 = vmatpush2.bf16.msra.mxu0 %v2456_v6  ;;  %1713 = vmatpush2.bf16.msra.mxu1 %v2459_v7 }
  0x42   :  { %1671 = vmatprep.subr.bf16.mxu0 %v2464_v8  ;;  %1714 = vmatprep.subr.bf16.mxu1 %v2467_v9 }
  0x45   :  { %1672 = vmatpush2.bf16.msra.mxu0 %v2462_v10  ;;  %1715 = vmatpush2.bf16.msra.mxu1 %v2465_v11 }
  0x46   :  { %1673 = vmatprep.subr.bf16.mxu0 %v2470_v12  ;;  %1716 = vmatprep.subr.bf16.mxu1 %v2473_v13 }
  0x49   :  { %1674 = vmatpush2.bf16.msra.mxu0 %v2468_v14  ;;  %1717 = vmatpush2.bf16.msra.mxu1 %v2471_v15 }
  0x4a   :  { %1729 = vmatprep.subr.bf16.mxu0 %v2476_v16  ;;  %1772 = vmatprep.subr.bf16.mxu1 %v2479_v17 }
  0x4b   :  { %10 = vsyncpa [#allocation3], 0  ;;  %v33_v18 = vlaneseq  ;;  %v31_v24 = vld [vmem:[%s3575_s2] sm:$0xf]  ;;  %v2474_v55 = vld [vmem:[%s3576_s3 + $0x190] ss:$28 sps:$4 sm:$0xff]  }
  0x4c   :  { %v2477_v56 = vld [vmem:[%s3576_s3 + $0x510] ss:$28 sps:$4 sm:$0xff]   ;;  %v2482_v59 = vld [vmem:[%s3576_s3 + $0x15c] ss:$28 sps:$4 sm:$0xff]   ;;  %v2488_v63 = vld [vmem:[%s3576_s3 + $0x124] ss:$28 sps:$4 sm:$0xff]  }
  0x4d   :  { %v3032_v19 = vshrl.u32 %v33_v18, 7  ;;  %v2485_v60 = vld [vmem:[%s3576_s3 + $0x4dc] ss:$28 sps:$4 sm:$0xff]   ;;  %v2491_v0 = vld [vmem:[%s3576_s3 + $0x4a4] ss:$28 sps:$4 sm:$0xff]   ;;  %vm2059_vm2 = vcmask 130048  }
  0x4e   :  { %v2480_v61 = vld [vmem:[%s3576_s3 + $0x158] ss:$28 sps:$4 sm:$0xff]   ;;  %v2486_v1 = vld [vmem:[%s3576_s3 + $0x120] ss:$28 sps:$4 sm:$0xff]   ;;  %v2494_v3 = vld [vmem:[%s3576_s3 + $0xec] ss:$28 sps:$4 sm:$0xff]  }
  0x4f   :  { %v39_v20 = vsub.s32 1, %v3032_v19  ;;  %v47_v21 = vsub.s32 3, %v3032_v19  ;;  %v35_v22 = vsub.s32 0, %v3032_v19  ;;  %v43_v23 = vsub.s32 2, %v3032_v19  ;;  %v2483_v62 = vld [vmem:[%s3576_s3 + $0x4d8] ss:$28 sps:$4 sm:$0xff]  }
  0x50   :  { %v2489_v2 = vld [vmem:[%s3576_s3 + $0x4a0] ss:$28 sps:$4 sm:$0xff]   ;;  %v2497_v4 = vld [vmem:[%s3576_s3 + $0x46c] ss:$28 sps:$4 sm:$0xff]   ;;  %v2500_v7 = vld [vmem:[%s3576_s3 + $0xb4] ss:$28 sps:$4 sm:$0xff]  }
  0x51   :  { %v40_v27 = vrot.slane %v31_v24, %v39_v20  ;;  %v48_v28 = vrot.slane %v31_v24, %v47_v21  ;;  %v36_v29 = vrot.slane %v31_v24, %v35_v22  ;;  %v44_v30 = vrot.slane %v31_v24, %v43_v23  ;;  %v2492_v5 = vld [vmem:[%s3576_s3 + $0xe8] ss:$28 sps:$4 sm:$0xff]   ;;  %v2503_v8 = vld [vmem:[%s3576_s3 + $0x434] ss:$28 sps:$4 sm:$0xff]   ;;  %v2506_v11 = vld [vmem:[%s3576_s3 + $0x7c] ss:$28 sps:$4 sm:$0xff]  }
  0x52   :  { %v2495_v6 = vld [vmem:[%s3576_s3 + $0x468] ss:$28 sps:$4 sm:$0xff]   ;;  %v2498_v9 = vld [vmem:[%s3576_s3 + $0xb0] ss:$28 sps:$4 sm:$0xff]   ;;  %v2509_v12 = vld [vmem:[%s3576_s3 + $0x3fc] ss:$28 sps:$4 sm:$0xff]  }
  0x53   :  { %v2501_v10 = vld [vmem:[%s3576_s3 + $0x430] ss:$28 sps:$4 sm:$0xff]   ;;  %v2504_v13 = vld [vmem:[%s3576_s3 + $0x78] ss:$28 sps:$4 sm:$0xff]   ;;  %v2512_v15 = vld [vmem:[%s3576_s3 + $0x44] ss:$28 sps:$4 sm:$0xff]  }
  0x54   :  { %v2507_v14 = vld [vmem:[%s3576_s3 + $0x3f8] ss:$28 sps:$4 sm:$0xff]   ;;  %v2515_v16 = vld [vmem:[%s3576_s3 + $0x3c4] ss:$28 sps:$4 sm:$0xff]   ;;  %v2518_v24 = vld [vmem:[%s3576_s3 + $0xc] ss:$28 sps:$4 sm:$0xff]  }
  0x55   :  { %v2510_v17 = vld [vmem:[%s3576_s3 + $0x40] ss:$28 sps:$4 sm:$0xff]  }
  0x56   :  { %v2513_v18 = vld [vmem:[%s3576_s3 + $0x3c0] ss:$28 sps:$4 sm:$0xff]  }
  0xcc   :  { %v134_v25 = vpop.f32.mrf.mxu0  ;;  %v177_v26 = vpop.f32.mrf.mxu1 }
  0xcd   :  { %v135_v39 = vadd.f32 %v134_v25, %v36_v29  ;;  %v178_v40 = vadd.f32 %v177_v26, %v44_v30  ;;  %v2521_v25 = vld [vmem:[%s3576_s3 + $0x38c] ss:$28 sps:$4 sm:$0xff]  }
  0xce   :  { %v136_v31 = vpop.f32.mrf.mxu0  ;;  %v179_v32 = vpop.f32.mrf.mxu1  ;;  %v2516_v26 = vld [vmem:[%s3576_s3 + $0x8] ss:$28 sps:$4 sm:$0xff]  }
  0xcf   :  { %v137_v35 = vadd.f32 %v136_v31, %v40_v27  ;;  %v180_v36 = vadd.f32 %v179_v32, %v48_v28  ;;  %v186_v51 = vmax.f32 %v135_v39, 0.0  ;;  %v188_v52 = vmax.f32 %v178_v40, 0.0  ;;  %v2525_v31 = vld [vmem:[%s3576_s3 + $0x6d0] ss:$28 sps:$4 sm:$0xff]   ;;  %v2530_v32 = vld [vmem:[%s3576_s3 + $0x31c] ss:$28 sps:$4 sm:$0xff]  }
  0xd0   :  { %v138_v33 = vpop.f32.mrf.mxu0  ;;  %v181_v34 = vpop.f32.mrf.mxu1  ;;  %v2537_v39 = vld [vmem:[%s3576_s3 + $0x660] ss:$28 sps:$4 sm:$0xff]   ;;  %v2542_v40 = vld [vmem:[%s3576_s3 + $0x2ac] ss:$28 sps:$4 sm:$0xff]  }
  0xd1   :  { %v139_v37 = vadd.f32 %v138_v33, %v36_v29  ;;  %v182_v38 = vadd.f32 %v181_v34, %v44_v30  ;;  %v187_v47 = vmax.f32 %v137_v35, 0.0  ;;  %v189_v48 = vmax.f32 %v180_v36, 0.0  ;;  %v2527_v29 = vld [vmem:[%s3576_s3 + $0x6d4] ss:$28 sps:$4 sm:$0xff]   ;;  %v2533_v33 = vld [vmem:[%s3576_s3 + $0x69c] ss:$28 sps:$4 sm:$0xff]  }
  0xd2   :  { %v140_v41 = vpop.f32.mrf.mxu0  ;;  %v183_v42 = vpop.f32.mrf.mxu1  ;;  %v2522_v30 = vld [vmem:[%s3576_s3 + $0x350] ss:$28 sps:$4 sm:$0xff]   ;;  %v2528_v34 = vld [vmem:[%s3576_s3 + $0x318] ss:$28 sps:$4 sm:$0xff]   ;;  %v2536_v36 = vld [vmem:[%s3576_s3 + $0x2e4] ss:$28 sps:$4 sm:$0xff]  }
  0xd3   :  { %v141_v43 = vadd.f32 %v140_v41, %v40_v27  ;;  %v184_v44 = vadd.f32 %v183_v42, %v48_v28  ;;  %v190_v45 = vmax.f32 %v139_v37, 0.0  ;;  %v192_v46 = vmax.f32 %v182_v38, 0.0  ;;  %v2519_v27 = vld [vmem:[%s3576_s3 + $0x388] ss:$28 sps:$4 sm:$0xff]   ;;  %v2524_v28 = vld [vmem:[%s3576_s3 + $0x354] ss:$28 sps:$4 sm:$0xff]  }
  0xd4   :  { %v2531_v35 = vld [vmem:[%s3576_s3 + $0x698] ss:$28 sps:$4 sm:$0xff]   ;;  %v2539_v37 = vld [vmem:[%s3576_s3 + $0x664] ss:$28 sps:$4 sm:$0xff]   ;;  %v2545_v41 = vld [vmem:[%s3576_s3 + $0x62c] ss:$28 sps:$4 sm:$0xff]  }
  0xd5   :  { %v191_v49 = vmax.f32 %v141_v43, 0.0  ;;  %v193_v50 = vmax.f32 %v184_v44, 0.0  ;;  %v3059_v57 = vpack.c.bf16 %v190_v45, %v186_v51  ;;  %v3061_v58 = vpack.c.bf16 %v192_v46, %v188_v52  ;;  %v2534_v38 = vld [vmem:[%s3576_s3 + $0x2e0] ss:$28 sps:$4 sm:$0xff]   ;;  %v2540_v42 = vld [vmem:[%s3576_s3 + $0x2a8] ss:$28 sps:$4 sm:$0xff]  }
  0xd6   :  { %v2543_v43 = vld [vmem:[%s3576_s3 + $0x628] ss:$28 sps:$4 sm:$0xff]   ;;  %v2548_v44 = vld [vmem:[%s3576_s3 + $0x274] ss:$28 sps:$4 sm:$0xff]  }
  0xd7   :  { %v3049_v53 = vpack.c.bf16 %v191_v49, %v187_v47  ;;  %v3051_v54 = vpack.c.bf16 %v193_v50, %v189_v48  ;;  %v2551_v45 = vld [vmem:[%s3576_s3 + $0x5f4] ss:$28 sps:$4 sm:$0xff]   ;;  %v2554_v48 = vld [vmem:[%s3576_s3 + $0x23c] ss:$28 sps:$4 sm:$0xff]   ;;  %v2560_v52 = vld [vmem:[%s3576_s3 + $0x204] ss:$28 sps:$4 sm:$0xff]  }
  0xd8   :  { %v2546_v46 = vld [vmem:[%s3576_s3 + $0x270] ss:$28 sps:$4 sm:$0xff]   ;;  %v2557_v49 = vld [vmem:[%s3576_s3 + $0x5bc] ss:$28 sps:$4 sm:$0xff]  }
  0xd9   :  { %1675 = vmatprep.mubr.bf16.mxu0 %v3049_v53  ;;  %1718 = vmatprep.mubr.bf16.mxu1 %v3051_v54  ;;  %v2549_v47 = vld [vmem:[%s3576_s3 + $0x5f0] ss:$28 sps:$4 sm:$0xff]   ;;  %v2552_v50 = vld [vmem:[%s3576_s3 + $0x238] ss:$28 sps:$4 sm:$0xff]  }
  0xda   :  { %1676 = vmatmul.mubr.bf16.vlgmr.msra.gmra.mxu0 %v3059_v57  ;;  %1719 = vmatmul.mubr.bf16.vlgmr.msra.gmra.mxu1 %v3061_v58  ;;  %v2555_v51 = vld [vmem:[%s3576_s3 + $0x5b8] ss:$28 sps:$4 sm:$0xff]  }
  0xdb   :  { %1730 = vmatpush1.bf16.msra.mxu0 %v2474_v55  ;;  %1773 = vmatpush1.bf16.msra.mxu1 %v2477_v56  ;;  %v2563_v55 = vld [vmem:[%s3576_s3 + $0x584] ss:$28 sps:$4 sm:$0xff]  }
  0xdc   :  { %1761 = vmatprep.mubr.bf16.mxu0 %v3049_v53  ;;  %1804 = vmatprep.mubr.bf16.mxu1 %v3051_v54  ;;  %v2558_v56 = vld [vmem:[%s3576_s3 + $0x200] ss:$28 sps:$4 sm:$0xff]  }
  0xdd   :  { %1731 = vmatprep.subr.bf16.mxu0 %v2482_v59  ;;  %1774 = vmatprep.subr.bf16.mxu1 %v2485_v60  ;;  %v2561_v59 = vld [vmem:[%s3576_s3 + $0x580] ss:$28 sps:$4 sm:$0xff]   ;;  %v2566_v60 = vld [vmem:[%s3576_s3 + $0x1cc] ss:$28 sps:$4 sm:$0xff]  }
  0xdf   :  { %1732 = vmatpush1.bf16.msra.mxu0 %v2480_v61  ;;  %1775 = vmatpush1.bf16.msra.mxu1 %v2483_v62  ;;  %v2569_v61 = vld [vmem:[%s3576_s3 + $0x54c] ss:$28 sps:$4 sm:$0xff]  }
  0xe0   :  { %1733 = vmatprep.subr.bf16.mxu0 %v2488_v63  ;;  %1776 = vmatprep.subr.bf16.mxu1 %v2491_v0  ;;  %v2564_v62 = vld [vmem:[%s3576_s3 + $0x1c8] ss:$28 sps:$4 sm:$0xff]   ;;  %v2572_v0 = vld [vmem:[%s3576_s3 + $0x19c] ss:$28 sps:$4 sm:$0xff]  }
  0xe1   :  { %v2567_v63 = vld [vmem:[%s3576_s3 + $0x548] ss:$28 sps:$4 sm:$0xff]  }
  0xe3   :  { %1734 = vmatpush1.bf16.msra.mxu0 %v2486_v1  ;;  %1777 = vmatpush1.bf16.msra.mxu1 %v2489_v2  ;;  %v2575_v1 = vld [vmem:[%s3576_s3 + $0x51c] ss:$28 sps:$4 sm:$0xff]  }
  0xe4   :  { %1735 = vmatprep.subr.bf16.mxu0 %v2494_v3  ;;  %1778 = vmatprep.subr.bf16.mxu1 %v2497_v4  ;;  %v2570_v2 = vld [vmem:[%s3576_s3 + $0x198] ss:$28 sps:$4 sm:$0xff]   ;;  %v2578_v4 = vld [vmem:[%s3576_s3 + $0x164] ss:$28 sps:$4 sm:$0xff]  }
  0xe5   :  { %v2573_v3 = vld [vmem:[%s3576_s3 + $0x518] ss:$28 sps:$4 sm:$0xff]  }
  0xe7   :  { %1736 = vmatpush1.bf16.msra.mxu0 %v2492_v5  ;;  %1779 = vmatpush1.bf16.msra.mxu1 %v2495_v6  ;;  %v2581_v5 = vld [vmem:[%s3576_s3 + $0x4e4] ss:$28 sps:$4 sm:$0xff]  }
  0xe8   :  { %1737 = vmatprep.subr.bf16.mxu0 %v2500_v7  ;;  %1780 = vmatprep.subr.bf16.mxu1 %v2503_v8  ;;  %v2576_v6 = vld [vmem:[%s3576_s3 + $0x160] ss:$28 sps:$4 sm:$0xff]   ;;  %v2584_v8 = vld [vmem:[%s3576_s3 + $0x12c] ss:$28 sps:$4 sm:$0xff]  }
  0xe9   :  { %v2579_v7 = vld [vmem:[%s3576_s3 + $0x4e0] ss:$28 sps:$4 sm:$0xff]  }
  0xeb   :  { %1738 = vmatpush1.bf16.msra.mxu0 %v2498_v9  ;;  %1781 = vmatpush1.bf16.msra.mxu1 %v2501_v10  ;;  %v2587_v9 = vld [vmem:[%s3576_s3 + $0x4ac] ss:$28 sps:$4 sm:$0xff]  }
  0xec   :  { %1739 = vmatprep.subr.bf16.mxu0 %v2506_v11  ;;  %1782 = vmatprep.subr.bf16.mxu1 %v2509_v12  ;;  %v2582_v10 = vld [vmem:[%s3576_s3 + $0x128] ss:$28 sps:$4 sm:$0xff]   ;;  %v2590_v12 = vld [vmem:[%s3576_s3 + $0xf4] ss:$28 sps:$4 sm:$0xff]  }
  0xed   :  { %v2585_v11 = vld [vmem:[%s3576_s3 + $0x4a8] ss:$28 sps:$4 sm:$0xff]  }
  0xef   :  { %1740 = vmatpush1.bf16.msra.mxu0 %v2504_v13  ;;  %1783 = vmatpush1.bf16.msra.mxu1 %v2507_v14  ;;  %v2593_v13 = vld [vmem:[%s3576_s3 + $0x474] ss:$28 sps:$4 sm:$0xff]  }
  0xf0   :  { %1741 = vmatprep.subr.bf16.mxu0 %v2512_v15  ;;  %1784 = vmatprep.subr.bf16.mxu1 %v2515_v16  ;;  %v2588_v14 = vld [vmem:[%s3576_s3 + $0xf0] ss:$28 sps:$4 sm:$0xff]   ;;  %v2596_v16 = vld [vmem:[%s3576_s3 + $0xbc] ss:$28 sps:$4 sm:$0xff]  }
  0xf1   :  { %v2591_v15 = vld [vmem:[%s3576_s3 + $0x470] ss:$28 sps:$4 sm:$0xff]  }
  0xf3   :  { %1742 = vmatpush1.bf16.msra.mxu0 %v2510_v17  ;;  %1785 = vmatpush1.bf16.msra.mxu1 %v2513_v18  ;;  %v2599_v17 = vld [vmem:[%s3576_s3 + $0x43c] ss:$28 sps:$4 sm:$0xff]  }
  0xf4   :  { %1743 = vmatprep.subr.bf16.mxu0 %v2518_v24  ;;  %1786 = vmatprep.subr.bf16.mxu1 %v2521_v25  ;;  %v2594_v18 = vld [vmem:[%s3576_s3 + $0xb8] ss:$28 sps:$4 sm:$0xff]   ;;  %v2602_v25 = vld [vmem:[%s3576_s3 + $0x84] ss:$28 sps:$4 sm:$0xff]  }
  0xf5   :  { %v2597_v24 = vld [vmem:[%s3576_s3 + $0x438] ss:$28 sps:$4 sm:$0xff]  }
  0xf7   :  { %1744 = vmatpush1.bf16.msra.mxu0 %v2516_v26  ;;  %1787 = vmatpush1.bf16.msra.mxu1 %v2519_v27  ;;  %v2605_v26 = vld [vmem:[%s3576_s3 + $0x404] ss:$28 sps:$4 sm:$0xff]  }
  0xf8   :  { %1745 = vmatprep.subr.bf16.mxu0 %v2524_v28  ;;  %1788 = vmatprep.subr.bf16.mxu1 %v2527_v29  ;;  %v2600_v27 = vld [vmem:[%s3576_s3 + $0x80] ss:$28 sps:$4 sm:$0xff]   ;;  %v2608_v29 = vld [vmem:[%s3576_s3 + $0x4c] ss:$28 sps:$4 sm:$0xff]  }
  0xf9   :  { %v2603_v28 = vld [vmem:[%s3576_s3 + $0x400] ss:$28 sps:$4 sm:$0xff]  }
  0xfb   :  { %1746 = vmatpush2.bf16.msra.mxu0 %v2522_v30  ;;  %1789 = vmatpush2.bf16.msra.mxu1 %v2525_v31  ;;  %v2611_v30 = vld [vmem:[%s3576_s3 + $0x3cc] ss:$28 sps:$4 sm:$0xff]  }
  0xfc   :  { %1747 = vmatprep.subr.bf16.mxu0 %v2530_v32  ;;  %1790 = vmatprep.subr.bf16.mxu1 %v2533_v33  ;;  %v2606_v31 = vld [vmem:[%s3576_s3 + $0x48] ss:$28 sps:$4 sm:$0xff]   ;;  %v2614_v33 = vld [vmem:[%s3576_s3 + $0x14] ss:$28 sps:$4 sm:$0xff]  }
  0xfd   :  { %v2609_v32 = vld [vmem:[%s3576_s3 + $0x3c8] ss:$28 sps:$4 sm:$0xff]  }
  0xff   :  { %1748 = vmatpush2.bf16.msra.mxu0 %v2528_v34  ;;  %1791 = vmatpush2.bf16.msra.mxu1 %v2531_v35  ;;  %v2617_v34 = vld [vmem:[%s3576_s3 + $0x394] ss:$28 sps:$4 sm:$0xff]  }
 0x100   :  { %1749 = vmatprep.subr.bf16.mxu0 %v2536_v36  ;;  %1792 = vmatprep.subr.bf16.mxu1 %v2539_v37  ;;  %v2612_v35 = vld [vmem:[%s3576_s3 + $0x10] ss:$28 sps:$4 sm:$0xff]   ;;  %v2620_v37 = vld [vmem:[%s3576_s3 + $0x35c] ss:$28 sps:$4 sm:$0xff]  }
 0x101   :  { %v2615_v36 = vld [vmem:[%s3576_s3 + $0x390] ss:$28 sps:$4 sm:$0xff]  }
 0x103   :  { %1750 = vmatpush2.bf16.msra.mxu0 %v2534_v38  ;;  %1793 = vmatpush2.bf16.msra.mxu1 %v2537_v39  ;;  %v2623_v38 = vld [vmem:[%s3576_s3 + $0x6dc] ss:$28 sps:$4 sm:$0xff]  }
 0x104   :  { %1751 = vmatprep.subr.bf16.mxu0 %v2542_v40  ;;  %1794 = vmatprep.subr.bf16.mxu1 %v2545_v41  ;;  %v2618_v39 = vld [vmem:[%s3576_s3 + $0x358] ss:$28 sps:$4 sm:$0xff]   ;;  %v2626_v41 = vld [vmem:[%s3576_s3 + $0x324] ss:$28 sps:$4 sm:$0xff]  }
 0x105   :  { %v2621_v40 = vld [vmem:[%s3576_s3 + $0x6d8] ss:$28 sps:$4 sm:$0xff]  }
 0x107   :  { %1752 = vmatpush2.bf16.msra.mxu0 %v2540_v42  ;;  %1795 = vmatpush2.bf16.msra.mxu1 %v2543_v43  ;;  %v2629_v42 = vld [vmem:[%s3576_s3 + $0x6a4] ss:$28 sps:$4 sm:$0xff]  }
 0x108   :  { %1753 = vmatprep.subr.bf16.mxu0 %v2548_v44  ;;  %1796 = vmatprep.subr.bf16.mxu1 %v2551_v45  ;;  %v2624_v43 = vld [vmem:[%s3576_s3 + $0x320] ss:$28 sps:$4 sm:$0xff]   ;;  %v2632_v45 = vld [vmem:[%s3576_s3 + $0x2ec] ss:$28 sps:$4 sm:$0xff]  }
 0x109   :  { %v2627_v44 = vld [vmem:[%s3576_s3 + $0x6a0] ss:$28 sps:$4 sm:$0xff]  }
 0x10b   :  { %1754 = vmatpush2.bf16.msra.mxu0 %v2546_v46  ;;  %1797 = vmatpush2.bf16.msra.mxu1 %v2549_v47  ;;  %v2635_v46 = vld [vmem:[%s3576_s3 + $0x66c] ss:$28 sps:$4 sm:$0xff]  }
 0x10c   :  { %1755 = vmatprep.subr.bf16.mxu0 %v2554_v48  ;;  %1798 = vmatprep.subr.bf16.mxu1 %v2557_v49  ;;  %v2630_v47 = vld [vmem:[%s3576_s3 + $0x2e8] ss:$28 sps:$4 sm:$0xff]   ;;  %v2638_v49 = vld [vmem:[%s3576_s3 + $0x2b4] ss:$28 sps:$4 sm:$0xff]  }
 0x10d   :  { %v2633_v48 = vld [vmem:[%s3576_s3 + $0x668] ss:$28 sps:$4 sm:$0xff]  }
 0x10f   :  { %1756 = vmatpush2.bf16.msra.mxu0 %v2552_v50  ;;  %1799 = vmatpush2.bf16.msra.mxu1 %v2555_v51  ;;  %v2641_v50 = vld [vmem:[%s3576_s3 + $0x634] ss:$28 sps:$4 sm:$0xff]  }
 0x110   :  { %1757 = vmatprep.subr.bf16.mxu0 %v2560_v52  ;;  %1800 = vmatprep.subr.bf16.mxu1 %v2563_v55  ;;  %v2636_v51 = vld [vmem:[%s3576_s3 + $0x2b0] ss:$28 sps:$4 sm:$0xff]   ;;  %v2644_v55 = vld [vmem:[%s3576_s3 + $0x27c] ss:$28 sps:$4 sm:$0xff]  }
 0x111   :  { %v2639_v52 = vld [vmem:[%s3576_s3 + $0x630] ss:$28 sps:$4 sm:$0xff]  }
 0x113   :  { %1758 = vmatpush2.bf16.msra.mxu0 %v2558_v56  ;;  %1801 = vmatpush2.bf16.msra.mxu1 %v2561_v59  ;;  %v2647_v56 = vld [vmem:[%s3576_s3 + $0x5fc] ss:$28 sps:$4 sm:$0xff]  }
 0x114   :  { %1759 = vmatprep.subr.bf16.mxu0 %v2566_v60  ;;  %1802 = vmatprep.subr.bf16.mxu1 %v2569_v61  ;;  %v2642_v59 = vld [vmem:[%s3576_s3 + $0x278] ss:$28 sps:$4 sm:$0xff]   ;;  %v2650_v61 = vld [vmem:[%s3576_s3 + $0x244] ss:$28 sps:$4 sm:$0xff]  }
 0x115   :  { %v2645_v60 = vld [vmem:[%s3576_s3 + $0x5f8] ss:$28 sps:$4 sm:$0xff]  }
 0x117   :  { %1760 = vmatpush2.bf16.msra.mxu0 %v2564_v62  ;;  %1803 = vmatpush2.bf16.msra.mxu1 %v2567_v63  ;;  %v2653_v62 = vld [vmem:[%s3576_s3 + $0x5c4] ss:$28 sps:$4 sm:$0xff]  }
 0x118   :  { %1815 = vmatprep.subr.bf16.mxu0 %v2572_v0  ;;  %1858 = vmatprep.subr.bf16.mxu1 %v2575_v1  ;;  %v2648_v63 = vld [vmem:[%s3576_s3 + $0x240] ss:$28 sps:$4 sm:$0xff]   ;;  %v2656_v1 = vld [vmem:[%s3576_s3 + $0x20c] ss:$28 sps:$4 sm:$0xff]  }
 0x119   :  { %v2651_v0 = vld [vmem:[%s3576_s3 + $0x5c0] ss:$28 sps:$4 sm:$0xff]  }
 0x11a   :  { %1762 = vmatmul.mubr.bf16.vlgmr.msra.gmra.mxu0 %v3059_v57  ;;  %1805 = vmatmul.mubr.bf16.vlgmr.msra.gmra.mxu1 %v3061_v58 }
 0x11b   :  { %1816 = vmatpush1.bf16.msra.mxu0 %v2570_v2  ;;  %1847 = vmatprep.mubr.bf16.mxu0 %v3049_v53  ;;  %v2659_v2 = vld [vmem:[%s3576_s3 + $0x58c] ss:$28 sps:$4 sm:$0xff]  }
 0x11c   :  { %1859 = vmatpush1.bf16.msra.mxu1 %v2573_v3  ;;  %1890 = vmatprep.mubr.bf16.mxu1 %v3051_v54  ;;  %v2654_v3 = vld [vmem:[%s3576_s3 + $0x208] ss:$28 sps:$4 sm:$0xff]  }
 0x11d   :  { %1817 = vmatprep.subr.bf16.mxu0 %v2578_v4  ;;  %1860 = vmatprep.subr.bf16.mxu1 %v2581_v5  ;;  %v2657_v4 = vld [vmem:[%s3576_s3 + $0x588] ss:$28 sps:$4 sm:$0xff]   ;;  %v2662_v5 = vld [vmem:[%s3576_s3 + $0x1d4] ss:$28 sps:$4 sm:$0xff]  }
 0x11f   :  { %1818 = vmatpush1.bf16.msra.mxu0 %v2576_v6  ;;  %v2665_v6 = vld [vmem:[%s3576_s3 + $0x554] ss:$28 sps:$4 sm:$0xff]  }
 0x120   :  { %1861 = vmatpush1.bf16.msra.mxu1 %v2579_v7  ;;  %1819 = vmatprep.subr.bf16.mxu0 %v2584_v8  ;;  %v2660_v7 = vld [vmem:[%s3576_s3 + $0x1d0] ss:$28 sps:$4 sm:$0xff]  }
 0x121   :  { %1862 = vmatprep.subr.bf16.mxu1 %v2587_v9  ;;  %v2663_v8 = vld [vmem:[%s3576_s3 + $0x550] ss:$28 sps:$4 sm:$0xff]   ;;  %v2666_v9 = vld [vmem:[%s3576_s3 + $0x360] ss:$28 sps:$4 sm:$0xff]  }
 0x123   :  { %1820 = vmatpush1.bf16.msra.mxu0 %v2582_v10  ;;  %v2667_v10 = vld [vmem:[%s3576_s3 + $0x6e0] ss:$28 sps:$4 sm:$0xff]  }
 0x124   :  { %1863 = vmatpush1.bf16.msra.mxu1 %v2585_v11  ;;  %1821 = vmatprep.subr.bf16.mxu0 %v2590_v12  ;;  %v2668_v11 = vld [vmem:[%s3576_s3 + $0x1a0] ss:$28 sps:$4 sm:$0xff]  }
 0x125   :  { %1864 = vmatprep.subr.bf16.mxu1 %v2593_v13  ;;  %v2669_v12 = vld [vmem:[%s3576_s3 + $0x520] ss:$28 sps:$4 sm:$0xff]   ;;  %v2670_v13 = vld [vmem:[%s3576_s3 + $0x328] ss:$28 sps:$4 sm:$0xff]  }
 0x127   :  { %1822 = vmatpush1.bf16.msra.mxu0 %v2588_v14  ;;  %v2671_v14 = vld [vmem:[%s3576_s3 + $0x6a8] ss:$28 sps:$4 sm:$0xff]  }
 0x128   :  { %1865 = vmatpush1.bf16.msra.mxu1 %v2591_v15  ;;  %1823 = vmatprep.subr.bf16.mxu0 %v2596_v16  ;;  %v2672_v15 = vld [vmem:[%s3576_s3 + $0x168] ss:$28 sps:$4 sm:$0xff]  }
 0x129   :  { %1866 = vmatprep.subr.bf16.mxu1 %v2599_v17  ;;  %v2673_v16 = vld [vmem:[%s3576_s3 + $0x4e8] ss:$28 sps:$4 sm:$0xff]   ;;  %v2674_v17 = vld [vmem:[%s3576_s3 + $0x2f0] ss:$28 sps:$4 sm:$0xff]  }
 0x12b   :  { %1824 = vmatpush1.bf16.msra.mxu0 %v2594_v18  ;;  %v2675_v18 = vld [vmem:[%s3576_s3 + $0x670] ss:$28 sps:$4 sm:$0xff]  }
 0x12c   :  { %1867 = vmatpush1.bf16.msra.mxu1 %v2597_v24  ;;  %1825 = vmatprep.subr.bf16.mxu0 %v2602_v25  ;;  %v2677_v24 = vld [vmem:[%s3576_s3 + $0x4b0] ss:$28 sps:$4 sm:$0xff]   ;;  %v2679_v25 = vld [vmem:[%s3576_s3 + $0x638] ss:$28 sps:$4 sm:$0xff]  }
 0x12d   :  { %1868 = vmatprep.subr.bf16.mxu1 %v2605_v26  ;;  %v2680_v26 = vld [vmem:[%s3576_s3 + $0xf8] ss:$28 sps:$4 sm:$0xff]  }
 0x12f   :  { %1826 = vmatpush1.bf16.msra.mxu0 %v2600_v27  ;;  %v2681_v27 = vld [vmem:[%s3576_s3 + $0x478] ss:$28 sps:$4 sm:$0xff]  }
 0x130   :  { %1869 = vmatpush1.bf16.msra.mxu1 %v2603_v28  ;;  %1827 = vmatprep.subr.bf16.mxu0 %v2608_v29  ;;  %v2682_v28 = vld [vmem:[%s3576_s3 + $0x280] ss:$28 sps:$4 sm:$0xff]  }
 0x131   :  { %1870 = vmatprep.subr.bf16.mxu1 %v2611_v30  ;;  %v2683_v29 = vld [vmem:[%s3576_s3 + $0x600] ss:$28 sps:$4 sm:$0xff]  }
 0x132   :  { %v2684_v30 = vld [vmem:[%s3576_s3 + $0xc0] ss:$28 sps:$4 sm:$0xff]  }
 0x133   :  { %1828 = vmatpush1.bf16.msra.mxu0 %v2606_v31  ;;  %v2685_v31 = vld [vmem:[%s3576_s3 + $0x440] ss:$28 sps:$4 sm:$0xff]  }
 0x134   :  { %1871 = vmatpush1.bf16.msra.mxu1 %v2609_v32  ;;  %1829 = vmatprep.subr.bf16.mxu0 %v2614_v33  ;;  %v2686_v32 = vld [vmem:[%s3576_s3 + $0x248] ss:$28 sps:$4 sm:$0xff]  }
 0x135   :  { %1872 = vmatprep.subr.bf16.mxu1 %v2617_v34  ;;  %v2687_v33 = vld [vmem:[%s3576_s3 + $0x5c8] ss:$28 sps:$4 sm:$0xff]  }
 0x136   :  { %v2688_v34 = vld [vmem:[%s3576_s3 + $0x88] ss:$28 sps:$4 sm:$0xff]  }
 0x137   :  { %1830 = vmatpush1.bf16.msra.mxu0 %v2612_v35  ;;  %v2689_v35 = vld [vmem:[%s3576_s3 + $0x408] ss:$28 sps:$4 sm:$0xff]  }
 0x138   :  { %1873 = vmatpush1.bf16.msra.mxu1 %v2615_v36  ;;  %1831 = vmatprep.subr.bf16.mxu0 %v2620_v37  ;;  %v2690_v36 = vld [vmem:[%s3576_s3 + $0x210] ss:$28 sps:$4 sm:$0xff]  }
 0x139   :  { %1874 = vmatprep.subr.bf16.mxu1 %v2623_v38  ;;  %v2691_v37 = vld [vmem:[%s3576_s3 + $0x590] ss:$28 sps:$4 sm:$0xff]  }
 0x13a   :  { %v2692_v38 = vld [vmem:[%s3576_s3 + $0x50] ss:$28 sps:$4 sm:$0xff]  }
 0x13b   :  { %1832 = vmatpush2.bf16.msra.mxu0 %v2618_v39  ;;  %v2693_v39 = vld [vmem:[%s3576_s3 + $0x3d0] ss:$28 sps:$4 sm:$0xff]  }
 0x13c   :  { %1875 = vmatpush2.bf16.msra.mxu1 %v2621_v40  ;;  %1833 = vmatprep.subr.bf16.mxu0 %v2626_v41  ;;  %v2694_v40 = vld [vmem:[%s3576_s3 + $0x1d8] ss:$28 sps:$4 sm:$0xff]  }
 0x13d   :  { %1876 = vmatprep.subr.bf16.mxu1 %v2629_v42  ;;  %v2695_v41 = vld [vmem:[%s3576_s3 + $0x558] ss:$28 sps:$4 sm:$0xff]  }
 0x13e   :  { %v2696_v42 = vld [vmem:[%s3576_s3 + $0x18] ss:$28 sps:$4 sm:$0xff]  }
 0x13f   :  { %1834 = vmatpush2.bf16.msra.mxu0 %v2624_v43  ;;  %v2697_v43 = vld [vmem:[%s3576_s3 + $0x398] ss:$28 sps:$4 sm:$0xff]  }
 0x140   :  { %1877 = vmatpush2.bf16.msra.mxu1 %v2627_v44  ;;  %1835 = vmatprep.subr.bf16.mxu0 %v2632_v45  ;;  %v3550_v44 = vld [vmem:[%s3577_s4] sm:$0x7f] }
 0x141   :  { %1878 = vmatprep.subr.bf16.mxu1 %v2635_v46  ;;  %v459_v45 = vrot.slane %v3550_v44, %v35_v22  ;;  %v463_v46 = vrot.slane %v3550_v44, %v39_v20 }
 0x143   :  { %1836 = vmatpush2.bf16.msra.mxu0 %v2630_v47 }
 0x144   :  { %1879 = vmatpush2.bf16.msra.mxu1 %v2633_v48  ;;  %1837 = vmatprep.subr.bf16.mxu0 %v2638_v49 }
 0x145   :  { %1880 = vmatprep.subr.bf16.mxu1 %v2641_v50 }
 0x147   :  { %1838 = vmatpush2.bf16.msra.mxu0 %v2636_v51 }
 0x148   :  { %1881 = vmatpush2.bf16.msra.mxu1 %v2639_v52  ;;  %1839 = vmatprep.subr.bf16.mxu0 %v2644_v55 }
 0x149   :  { %1882 = vmatprep.subr.bf16.mxu1 %v2647_v56 }
 0x14b   :  { %1840 = vmatpush2.bf16.msra.mxu0 %v2642_v59 }
 0x14c   :  { %1883 = vmatpush2.bf16.msra.mxu1 %v2645_v60  ;;  %1841 = vmatprep.subr.bf16.mxu0 %v2650_v61 }
 0x14d   :  { %1884 = vmatprep.subr.bf16.mxu1 %v2653_v62 }
 0x14f   :  { %1842 = vmatpush2.bf16.msra.mxu0 %v2648_v63 }
 0x150   :  { %1885 = vmatpush2.bf16.msra.mxu1 %v2651_v0  ;;  %1843 = vmatprep.subr.bf16.mxu0 %v2656_v1 }
 0x151   :  { %1886 = vmatprep.subr.bf16.mxu1 %v2659_v2 }
 0x153   :  { %1844 = vmatpush2.bf16.msra.mxu0 %v2654_v3 }
 0x154   :  { %1887 = vmatpush2.bf16.msra.mxu1 %v2657_v4  ;;  %1845 = vmatprep.subr.bf16.mxu0 %v2662_v5 }
 0x155   :  { %1888 = vmatprep.subr.bf16.mxu1 %v2665_v6 }
 0x157   :  { %1846 = vmatpush2.bf16.msra.mxu0 %v2660_v7 }
 0x158   :  { %1889 = vmatpush2.bf16.msra.mxu1 %v2663_v8  ;;  %2320 = vmatprep.subr.bf16.mxu0 %v2666_v9 }
 0x159   :  { %2342 = vmatprep.subr.bf16.mxu1 %v2667_v10 }
 0x15a   :  { %1848 = vmatmul.mubr.bf16.vlgmr.msra.gmra.mxu0 %v3059_v57 }
 0x15b   :  { %1891 = vmatmul.mubr.bf16.vlgmr.msra.gmra.mxu1 %v3061_v58  ;;  %2321 = vmatpush3.bf16.msra.mxu0 %v2668_v11 }
 0x15c   :  { %1933 = vmatprep.mubr.bf16.mxu0 %v3049_v53  ;;  %2343 = vmatpush3.bf16.msra.mxu1 %v2669_v12  ;;  %v2676_v53 = vld [vmem:[%s3576_s3 + $0x130] ss:$28 sps:$4 sm:$0xff]  }
 0x15d   :  { %1974 = vmatprep.mubr.bf16.mxu1 %v3051_v54  ;;  %2322 = vmatprep.subr.bf16.mxu0 %v2670_v13  ;;  %v2678_v54 = vld [vmem:[%s3576_s3 + $0x2b8] ss:$28 sps:$4 sm:$0xff]   ;;  %s2777_s3 = smov [#allocation2]  }
 0x15e   :  { %2344 = vmatprep.subr.bf16.mxu1 %v2671_v14  ;;  %s2073_s4 = sshll.u32 %s2777_s3, 4  ;;  %s2074_s4 = int_to_ptr.vmem [resolvable:$true] %s2073_s4 }
 0x15f   :  { %2323 = vmatpush3.bf16.msra.mxu0 %v2672_v15  ;;  %s2754_s15 = scalar_lea.vmem %s2074_s4, 1792  ;;  %p2759_p1 = scmp.lt.s32.totalorder %s2074_s4, %s2074_s4 }
 0x160   :  { %2345 = vmatpush3.bf16.msra.mxu1 %v2673_v16  ;;  %2324 = vmatprep.subr.bf16.mxu0 %v2674_v17  ;;  %p2755_p0 = scmp.ne.s32.totalorder %s2074_s4, %s2754_s15  ;;  %p2760_p2 = scmp.lt.s32.totalorder %s2754_s15, %s2754_s15 }
 0x161   :  { %2346 = vmatprep.subr.bf16.mxu1 %v2675_v18 }
 0x162   :  { %p2761_p3 = por %p2760_p2, %p2759_p1 }
 0x163   :  { %2325 = vmatpush3.bf16.msra.mxu0 %v2676_v53  ;;  %v467_v53 = vrot.slane %v3550_v44, %v43_v23 }
 0x164   :  { %2347 = vmatpush3.bf16.msra.mxu1 %v2677_v24  ;;  %2326 = vmatprep.subr.bf16.mxu0 %v2678_v54  ;;  %v471_v24 = vrot.slane %v3550_v44, %v47_v21  ;;  %p2762_p4 = pnand %p2761_p3, %p2755_p0 }
 0x165   :  { %2348 = vmatprep.subr.bf16.mxu1 %v2679_v25 }
 0x167   :  { %2327 = vmatpush3.bf16.msra.mxu0 %v2680_v26 }
 0x168   :  { %2349 = vmatpush3.bf16.msra.mxu1 %v2681_v27  ;;  %2328 = vmatprep.subr.bf16.mxu0 %v2682_v28 }
 0x169   :  { %2350 = vmatprep.subr.bf16.mxu1 %v2683_v29 }
 0x16b   :  { %2329 = vmatpush3.bf16.msra.mxu0 %v2684_v30 }
 0x16c   :  { %2351 = vmatpush3.bf16.msra.mxu1 %v2685_v31  ;;  %2330 = vmatprep.subr.bf16.mxu0 %v2686_v32 }
 0x16d   :  { %2352 = vmatprep.subr.bf16.mxu1 %v2687_v33 }
 0x16f   :  { %2331 = vmatpush3.bf16.msra.mxu0 %v2688_v34 }
 0x170   :  { %2353 = vmatpush3.bf16.msra.mxu1 %v2689_v35  ;;  %2332 = vmatprep.subr.bf16.mxu0 %v2690_v36 }
 0x171   :  { %2354 = vmatprep.subr.bf16.mxu1 %v2691_v37 }
 0x173   :  { %2333 = vmatpush3.bf16.msra.mxu0 %v2692_v38 }
 0x174   :  { %2355 = vmatpush3.bf16.msra.mxu1 %v2693_v39  ;;  %2334 = vmatprep.subr.bf16.mxu0 %v2694_v40 }
 0x175   :  { %2356 = vmatprep.subr.bf16.mxu1 %v2695_v41 }
 0x177   :  { %2335 = vmatpush3.bf16.msra.mxu0 %v2696_v42 }
 0x178   :  { %2357 = vmatpush3.bf16.msra.mxu1 %v2697_v43 }
 0x17a   :  { %1934 = vmatmul.mubr.bf16.vlgmr.msra.gmra.mxu0 %v3059_v57 }
 0x17b   :  { %1975 = vmatmul.mubr.bf16.vlgmr.msra.gmra.mxu1 %v3061_v58 }
 0x19a   :  { %v1677_v47 = vpop.f32.mrf.mxu0  ;;  %v1720_v48 = vpop.f32.mrf.mxu1 }
 0x19b   :  { %v1678_v49 = vadd.f32 %v1677_v47, %v459_v45 }
 0x19c   :  { %v1679_v50 = vpop.f32.mrf.mxu0  ;;  %v1722_v57 = vpop.f32.mrf.mxu1 }
 0x19d   :  { %v1721_v51 = vadd.f32 %v1720_v48, %v1678_v49  ;;  %v1680_v58 = vadd.f32 %v1679_v50, %v463_v46 }
 0x19e   :  { %v1681_v52 = vpop.f32.mrf.mxu0  ;;  %v1724_v55 = vpop.f32.mrf.mxu1 }
 0x19f   :  { %v1983_v56 = vsub.f32 0.0, %v1721_v51  ;;  %v1723_v59 = vadd.f32 %v1722_v57, %v1680_v58  ;;  %v1682_v60 = vadd.f32 %v1681_v52, %v459_v45 }
 0x1a0   :  { %v1683_v61 = vpop.f32.mrf.mxu0  ;;  %v1726_v1 = vpop.f32.mrf.mxu1 }
 0x1a1   :  { %v1997_v62 = vmul.f32 1.442695, %v1983_v56  ;;  %v1984_v63 = vsub.f32 0.0, %v1723_v59  ;;  %v1725_v22 = vadd.f32 %v1724_v55, %v1682_v60  ;;  %v1684_v0 = vadd.f32 %v1683_v61, %v463_v46 }
 0x1a2   :  { %v474_v61 = vsub.s32 4, %v3032_v19 }
 0x1a3   :  { %2698 = vpow2.f32 %v1997_v62  ;;  %v1999_v20 = vmul.f32 1.442695, %v1984_v63  ;;  %v1990_v2 = vsub.f32 0.0, %v1725_v22  ;;  %v1727_v3 = vadd.f32 %v1726_v1, %v1684_v0 }
 0x1a4   :  { %v478_v62 = vsub.s32 5, %v3032_v19  ;;  %v475_v63 = vrot.slane %v3550_v44, %v474_v61 }
 0x1a5   :  { %2700 = vpow2.f32 %v1999_v20  ;;  %v2011_v4 = vmul.f32 1.442695, %v1990_v2  ;;  %v1991_v5 = vsub.f32 0.0, %v1727_v3 }
 0x1a6   :  { %v479_v22 = vrot.slane %v3550_v44, %v478_v62 }
 0x1a7   :  { %2702 = vpow2.f32 %v2011_v4  ;;  %v2013_v6 = vmul.f32 1.442695, %v1991_v5 }
 0x1a9   :  { %2704 = vpow2.f32 %v2013_v6 }
 0x1b0   :  { %v2699_v7 = vpop.eup %2698 }
 0x1b1   :  { %v2025_v8 = vadd.f32 1.0, %v2699_v7 }
 0x1b2   :  { %v2701_v9 = vpop.eup %2700 }
 0x1b3   :  { %2706 = vrcp.f32 %v2025_v8  ;;  %v2026_v10 = vadd.f32 1.0, %v2701_v9 }
 0x1b4   :  { %v2703_v11 = vpop.eup %2702 }
 0x1b5   :  { %2708 = vrcp.f32 %v2026_v10  ;;  %v2032_v12 = vadd.f32 1.0, %v2703_v11 }
 0x1b6   :  { %v2705_v13 = vpop.eup %2704 }
 0x1b7   :  { %2710 = vrcp.f32 %v2032_v12  ;;  %v2033_v14 = vadd.f32 1.0, %v2705_v13 }
 0x1b9   :  { %2712 = vrcp.f32 %v2033_v14 }
 0x1c0   :  { %v2707_v15 = vpop.eup %2706 }
 0x1c1   :  { %2053 = vst [vmem:[#allocation2] sm:$0xff] %v2707_v15 }
 0x1c2   :  { %v2709_v16 = vpop.eup %2708 }
 0x1c3   :  { %2054 = vst [vmem:[#allocation2 + $0x8] sm:$0xff] %v2709_v16 }
 0x1c4   :  { %v2711_v17 = vpop.eup %2710 }
 0x1c5   :  { %2061 = vst [vmem:[#allocation2 + $0x38] sm:$0xff] %v2711_v17 }
 0x1c6   :  { %v2713_v18 = vpop.eup %2712 }
 0x1c7   :  { %2062 = vst [vmem:[#allocation2 + $0x40] sm:$0xff] %v2713_v18 }
 0x1da   :  { %v1763_v54 = vpop.f32.mrf.mxu0  ;;  %v1806_v25 = vpop.f32.mrf.mxu1 }
 0x1db   :  { %v1764_v26 = vadd.f32 %v1763_v54, %v467_v53 }
 0x1dc   :  { %v1765_v27 = vpop.f32.mrf.mxu0  ;;  %v1808_v28 = vpop.f32.mrf.mxu1 }
 0x1dd   :  { %v1807_v29 = vadd.f32 %v1806_v25, %v1764_v26  ;;  %v1766_v30 = vadd.f32 %v1765_v27, %v471_v24 }
 0x1de   :  { %v1767_v31 = vpop.f32.mrf.mxu0  ;;  %v1810_v32 = vpop.f32.mrf.mxu1 }
 0x1df   :  { %v1985_v33 = vsub.f32 0.0, %v1807_v29  ;;  %v1809_v34 = vadd.f32 %v1808_v28, %v1766_v30  ;;  %v1768_v35 = vadd.f32 %v1767_v31, %v467_v53 }
 0x1e0   :  { %v1769_v36 = vpop.f32.mrf.mxu0  ;;  %v1812_v40 = vpop.f32.mrf.mxu1 }
 0x1e1   :  { %v2001_v37 = vmul.f32 1.442695, %v1985_v33  ;;  %v1986_v38 = vsub.f32 0.0, %v1809_v34  ;;  %v1811_v23 = vadd.f32 %v1810_v32, %v1768_v35  ;;  %v1770_v39 = vadd.f32 %v1769_v36, %v471_v24 }
 0x1e2   :  { %v482_v34 = vsub.s32 6, %v3032_v19 }
 0x1e3   :  { %2714 = vpow2.f32 %v2001_v37  ;;  %v2003_v21 = vmul.f32 1.442695, %v1986_v38  ;;  %v1992_v41 = vsub.f32 0.0, %v1811_v23  ;;  %v1813_v42 = vadd.f32 %v1812_v40, %v1770_v39 }
 0x1e4   :  { %v483_v37 = vrot.slane %v3550_v44, %v482_v34 }
 0x1e5   :  { %2716 = vpow2.f32 %v2003_v21  ;;  %v2015_v43 = vmul.f32 1.442695, %v1992_v41  ;;  %v1993_v45 = vsub.f32 0.0, %v1813_v42 }
 0x1e7   :  { %2718 = vpow2.f32 %v2015_v43  ;;  %v2017_v46 = vmul.f32 1.442695, %v1993_v45 }
 0x1e9   :  { %2720 = vpow2.f32 %v2017_v46 }
 0x1f0   :  { %v2715_v47 = vpop.eup %2714 }
 0x1f1   :  { %v2027_v48 = vadd.f32 1.0, %v2715_v47 }
 0x1f2   :  { %v2717_v49 = vpop.eup %2716 }
 0x1f3   :  { %2722 = vrcp.f32 %v2027_v48  ;;  %v2028_v50 = vadd.f32 1.0, %v2717_v49 }
 0x1f4   :  { %v2719_v57 = vpop.eup %2718 }
 0x1f5   :  { %2724 = vrcp.f32 %v2028_v50  ;;  %v2034_v51 = vadd.f32 1.0, %v2719_v57 }
 0x1f6   :  { %v2721_v58 = vpop.eup %2720 }
 0x1f7   :  { %2726 = vrcp.f32 %v2034_v51  ;;  %v2035_v52 = vadd.f32 1.0, %v2721_v58 }
 0x1f9   :  { %2728 = vrcp.f32 %v2035_v52 }
 0x200   :  { %v2723_v55 = vpop.eup %2722 }
 0x201   :  { %2055 = vst [vmem:[#allocation2 + $0x10] sm:$0xff] %v2723_v55 }
 0x202   :  { %v2725_v56 = vpop.eup %2724 }
 0x203   :  { %2056 = vst [vmem:[#allocation2 + $0x18] sm:$0xff] %v2725_v56 }
 0x204   :  { %v2727_v59 = vpop.eup %2726 }
 0x205   :  { %2063 = vst [vmem:[#allocation2 + $0x48] sm:$0xff] %v2727_v59 }
 0x206   :  { %v2729_v60 = vpop.eup %2728 }
 0x207   :  { %2064 = vst [vmem:[#allocation2 + $0x50] sm:$0xff] %v2729_v60 }
 0x21a   :  { %v1849_v0 = vpop.f32.mrf.mxu0 }
 0x21b   :  { %v1850_v1 = vadd.f32 %v1849_v0, %v475_v63  ;;  %v1892_v20 = vpop.f32.mrf.mxu1 }
 0x21c   :  { %v1851_v2 = vpop.f32.mrf.mxu0 }
 0x21d   :  { %v1893_v3 = vadd.f32 %v1892_v20, %v1850_v1  ;;  %v1852_v4 = vadd.f32 %v1851_v2, %v479_v22  ;;  %v1894_v5 = vpop.f32.mrf.mxu1 }
 0x21e   :  { %v1853_v6 = vpop.f32.mrf.mxu0 }
 0x21f   :  { %v1987_v7 = vsub.f32 0.0, %v1893_v3  ;;  %v1895_v8 = vadd.f32 %v1894_v5, %v1852_v4  ;;  %v1854_v9 = vadd.f32 %v1853_v6, %v475_v63  ;;  %v1896_v10 = vpop.f32.mrf.mxu1 }
 0x220   :  { %v1855_v11 = vpop.f32.mrf.mxu0 }
 0x221   :  { %v2005_v12 = vmul.f32 1.442695, %v1987_v7  ;;  %v1988_v13 = vsub.f32 0.0, %v1895_v8  ;;  %v1897_v14 = vadd.f32 %v1896_v10, %v1854_v9  ;;  %v1856_v15 = vadd.f32 %v1855_v11, %v479_v22  ;;  %v1898_v16 = vpop.f32.mrf.mxu1 }
 0x223   :  { %2730 = vpow2.f32 %v2005_v12  ;;  %v2007_v17 = vmul.f32 1.442695, %v1988_v13  ;;  %v1994_v18 = vsub.f32 0.0, %v1897_v14  ;;  %v1899_v53 = vadd.f32 %v1898_v16, %v1856_v15 }
 0x225   :  { %2732 = vpow2.f32 %v2007_v17  ;;  %v2019_v24 = vmul.f32 1.442695, %v1994_v18  ;;  %v1995_v54 = vsub.f32 0.0, %v1899_v53 }
 0x227   :  { %2734 = vpow2.f32 %v2019_v24  ;;  %v2021_v25 = vmul.f32 1.442695, %v1995_v54 }
 0x229   :  { %2736 = vpow2.f32 %v2021_v25 }
 0x230   :  { %v2731_v26 = vpop.eup %2730 }
 0x231   :  { %v2029_v27 = vadd.f32 1.0, %v2731_v26 }
 0x232   :  { %v2733_v28 = vpop.eup %2732 }
 0x233   :  { %2738 = vrcp.f32 %v2029_v27  ;;  %v2030_v29 = vadd.f32 1.0, %v2733_v28 }
 0x234   :  { %v2735_v30 = vpop.eup %2734 }
 0x235   :  { %2740 = vrcp.f32 %v2030_v29  ;;  %v2036_v31 = vadd.f32 1.0, %v2735_v30 }
 0x236   :  { %v2737_v32 = vpop.eup %2736 }
 0x237   :  { %2742 = vrcp.f32 %v2036_v31  ;;  %v2037_v33 = vadd.f32 1.0, %v2737_v32 }
 0x239   :  { %2744 = vrcp.f32 %v2037_v33 }
 0x23a   :  { %v2336_v35 = vpop.f32.mrf.mxu0 }
 0x23b   :  { %v2358_v36 = vpop.f32.mrf.mxu1 }
 0x23c   :  { %v2337_v38 = vpop.f32.mrf.mxu0 }
 0x23d   :  { %v2338_v23 = vadd.f32 %v2337_v38, %v2336_v35  ;;  %v2359_v39 = vpop.f32.mrf.mxu1 }
 0x23e   :  { %v2339_v40 = vpop.f32.mrf.mxu0  ;;  %v2360_v41 = vadd.f32 %v2359_v39, %v2358_v36 }
 0x23f   :  { %v1936_v21 = vadd.f32 %v2338_v23, %v483_v37  ;;  %v2361_v42 = vpop.f32.mrf.mxu1 }
 0x240   :  { %v2739_v43 = vpop.eup %2738  ;;  %v2340_v45 = vpop.f32.mrf.mxu0 }
 0x241   :  { %2057 = vst [vmem:[#allocation2 + $0x20] sm:$0xff] %v2739_v43  ;;  %v1977_v46 = vadd.f32 %v2360_v41, %v1936_v21  ;;  %v2341_v47 = vadd.f32 %v2340_v45, %v2339_v40  ;;  %v2362_v48 = vpop.f32.mrf.mxu1 }
 0x242   :  { %v2741_v49 = vpop.eup %2740  ;;  %v2363_v57 = vadd.f32 %v2362_v48, %v2361_v42 }
 0x243   :  { %2058 = vst [vmem:[#allocation2 + $0x28] sm:$0xff] %v2741_v49  ;;  %v1989_v19 = vsub.f32 0.0, %v1977_v46  ;;  %v1939_v50 = vadd.f32 %v2341_v47, %v483_v37 }
 0x244   :  { %v2743_v51 = vpop.eup %2742 }
 0x245   :  { %2065 = vst [vmem:[#allocation2 + $0x58] sm:$0xff] %v2743_v51  ;;  %v2009_v44 = vmul.f32 1.442695, %v1989_v19  ;;  %v1980_v58 = vadd.f32 %v2363_v57, %v1939_v50 }
 0x246   :  { %v2745_v52 = vpop.eup %2744 }
 0x247   :  { %2066 = vst [vmem:[#allocation2 + $0x60] sm:$0xff] %v2745_v52  ;;  %2746 = vpow2.f32 %v2009_v44  ;;  %v1996_v55 = vsub.f32 0.0, %v1980_v58 }
 0x249   :  { %v2023_v56 = vmul.f32 1.442695, %v1996_v55 }
 0x24b   :  { %2748 = vpow2.f32 %v2023_v56 }
 0x254   :  { %v2747_v59 = vpop.eup %2746 }
 0x255   :  { %v2031_v60 = vadd.f32 1.0, %v2747_v59 }
 0x257   :  { %2750 = vrcp.f32 %v2031_v60 }
 0x258   :  { %v2749_v61 = vpop.eup %2748 }
 0x259   :  { %v2038_v62 = vadd.f32 1.0, %v2749_v61 }
 0x25b   :  { %2752 = vrcp.f32 %v2038_v62 }
 0x264   :  { %v2751_v63 = vpop.eup %2750 }
 0x265   :  { %2060 = vst.msk [vmem:[#allocation2 + $0x30] sm:$0xff] %vm2059_vm2, %v2751_v63 }
 0x268   :  { %v2753_v22 = vpop.eup %2752 }
 0x269   :  { %2067 = vst.msk [vmem:[#allocation2 + $0x68] sm:$0xff] %vm2059_vm2, %v2753_v22 }
 0x26a   :  { %2765 = shalt.err (!%p2762_p4)
}
 0x26b   :  { %s2778_s16 = smov 896   ;;  %s2779_s17 = smov 56  }
 0x26c   :  { %2079 = dma.vmem_to_hbm [thread:$0]  %s2074_s4, 1792, %s3578_s5, [#allocation3], %s2778_s16, %s2778_s16, %s2779_s17  }
 0x26d   :  { %2774 = dma.done.wait [#allocation3], 1792  }
 0x26e   :  { %2775 = vsyncadd [#allocation3], 4294965504 }
 0x26f   :  { %2083 = vsyncpa [#allocation3], 1 }

</bundles_post_ra>
